<compile_context>
chip_gen: v6e
topology: v6e:2x2x1
jax: 0.10.0
libtpu: 0.0.40
codegen_flags: <defaults>
</compile_context>

<pallas_src>
import functools

import jax
import jax.numpy as jnp
from jax import lax
from jax.experimental import pallas as pl
from jax.experimental.pallas import tpu as pltpu

LANES = 128
SUBLANES = 8


def _cdiv(a, b):
    return (a + b - 1) // b


def _round_down(a, b):
    return (a // b) * b


def _sublane_multiple(dtype):
    # f32 -> 8 rows, bf16 -> 16, int8/fp8 -> 32 (sub-32-bit dtypes pack along sublanes).
    return SUBLANES * max(1, 4 // jnp.dtype(dtype).itemsize)


def _default_num_core_splits():
    # "parallel" grid axes only shard across TensorCores on megacore parts
    # (v7x, v4, v5p). On single-TC chips (v5e/v6e) the split is just a serial
    # loop, so default to 1 there. Best-effort detection; fall back to 1.
    try:
        kind = jax.devices()[0].device_kind.lower()
    except Exception:
        return 1
    if any(tag in kind for tag in ("v7", "v4", "v5p", "v5 p")):
        return 2
    return 1


def _sq_err_partial_kernel(p_ref, t_ref, o_ref, *, tiles_per_core, tile_rows,
                           valid_rows, total_tiles, last_tile_partial,
                           has_dup_tiles):
    """Accumulate sum((p - t)^2) for this core's row range into an (8,128) f32 block."""
    t_idx = pl.program_id(1)  # reduction axis (last, "arbitrary")

    @pl.when(t_idx == 0)
    def _():
        o_ref[...] = jnp.zeros_like(o_ref)

    g = pl.program_id(0) * tiles_per_core + t_idx  # global tile index (unclamped)

    def accumulate(masked):
        d = p_ref[...].astype(jnp.float32) - t_ref[...].astype(jnp.float32)
        sq = d * d
        if masked:
            # Only the (single) partial last tile pays for the mask.
            row_ids = (lax.broadcasted_iota(jnp.int32, (tile_rows, LANES), 0)
                       + g * tile_rows)
            sq = jnp.where(row_ids < valid_rows, sq, jnp.float32(0.0))
        # Fold (tile_rows, 128) -> (8, 128): pure VPU adds; the expensive
        # cross-lane reduction happens exactly once, on the tiny output, in JAX.
        o_ref[...] += jnp.sum(sq.reshape(-1, SUBLANES, LANES), axis=0)

    if last_tile_partial or has_dup_tiles:
        n_full_tiles = total_tiles - 1 if last_tile_partial else total_tiles

        @pl.when(g < n_full_tiles)
        def _():
            accumulate(masked=False)

        if last_tile_partial:
            @pl.when(g == total_tiles - 1)
            def _():
                accumulate(masked=True)
        # Clamped duplicate tiles (g >= total_tiles) skip the accumulate entirely.
    else:
        accumulate(masked=False)


def rmse_loss(pred, true, epsilon=1e-8, *, target_block_bytes=4 << 20,
              num_core_splits=None):
    """RMSE = sqrt(mean((pred - true)^2) + epsilon); matches torch sqrt(MSELoss + eps)."""
    assert pred.shape == true.shape, "pred/true shapes must match (MSELoss semantics)"
    n_true = pred.size

    p_flat = pred.reshape(-1)
    t_flat = true.reshape(-1)

    # Bulk = largest prefix that is a multiple of (sublane_pack * 128) elements
    # -> reshapes to a lane-dense [rows, 128] slab with rows % sublane_pack == 0.
    # The tiny leftover tail is summed in plain JAX (no full-array padding copy).
    sub_mult = max(_sublane_multiple(pred.dtype), _sublane_multiple(true.dtype))
    chunk = sub_mult * LANES
    bulk_n = _round_down(n_true, chunk)

    if bulk_n < n_true:
        dt = p_flat[bulk_n:].astype(jnp.float32) - t_flat[bulk_n:].astype(jnp.float32)
        total = jnp.sum(dt * dt)
    else:
        total = jnp.float32(0.0)

    if bulk_n > 0:
        rows = bulk_n // LANES  # multiple of sub_mult
        assert rows < 2 ** 31, "row index arithmetic is int32"
        p2d = p_flat[:bulk_n].reshape(rows, LANES)
        t2d = t_flat[:bulk_n].reshape(rows, LANES)

        # Bytes-per-block tile target: ~4 MiB per input block regardless of dtype
        # (f32 -> 8192 rows, bf16 -> 16384, ...). 2 inputs x 2 pipeline buffers
        # x 4 MiB = 16 MiB of input VMEM, covered by vmem_limit_bytes=32 MiB,
        # which is within physical VMEM on v5e/v6e (128 MiB) and v7x (64 MiB).
        itemsize = max(jnp.dtype(pred.dtype).itemsize, jnp.dtype(true.dtype).itemsize)
        target = max(sub_mult,
                     _round_down(int(target_block_bytes) // (LANES * itemsize), 32))
        tile_rows = rows if rows <= target else target  # full-extent block when small

        total_tiles = _cdiv(rows, tile_rows)
        if num_core_splits is None:
            num_core_splits = _default_num_core_splits()
        num_splits = max(1, min(int(num_core_splits), total_tiles))
        tiles_per_core = _cdiv(total_tiles, num_splits)
        last_tile_partial = (rows % tile_rows) != 0
        has_dup_tiles = (num_splits * tiles_per_core) != total_tiles

        def in_index_map(c, t):
            g = c * tiles_per_core + t
            # Clamp so no DMA ever starts fully out of bounds; duplicated reads
            # from an uneven split skip accumulation inside the kernel.
            return (jnp.minimum(g, total_tiles - 1), 0)

        kernel = functools.partial(
            _sq_err_partial_kernel,
            tiles_per_core=tiles_per_core,
            tile_rows=tile_rows,
            valid_rows=rows,
            total_tiles=total_tiles,
            last_tile_partial=last_tile_partial,
            has_dup_tiles=has_dup_tiles,
        )

        cost = pl.CostEstimate(
            flops=3 * int(bulk_n),
            transcendentals=0,
            bytes_accessed=int(bulk_n) * (p2d.dtype.itemsize + t2d.dtype.itemsize)
            + num_splits * SUBLANES * LANES * 4,
        )

        partials = pl.pallas_call(
            kernel,
            out_shape=jax.ShapeDtypeStruct((num_splits * SUBLANES, LANES), jnp.float32),
            grid_spec=pltpu.PrefetchScalarGridSpec(
                num_scalar_prefetch=0,
                grid=(num_splits, tiles_per_core),
                in_specs=[
                    pl.BlockSpec((tile_rows, LANES), in_index_map),
                    pl.BlockSpec((tile_rows, LANES), in_index_map),
                ],
                out_specs=pl.BlockSpec((SUBLANES, LANES), lambda c, t: (c, 0)),
            ),
            compiler_params=pltpu.CompilerParams(
                # Leading axis splits rows across TensorCores (2x aggregate HBM
                # bandwidth on megacore parts). Trailing axis is the reduction
                # -> output block resident across it.
                dimension_semantics=("parallel", "arbitrary"),
                vmem_limit_bytes=32 * 1024 * 1024,
            ),
            cost_estimate=cost,
        )(p2d, t2d)

        total = total + jnp.sum(partials)

    # Epsilon added to MSE before sqrt, matching the PyTorch module.
    mse = total / jnp.float32(n_true)
    return jnp.sqrt(mse + jnp.float32(epsilon))


if __name__ == "__main__":
    key = jax.random.PRNGKey(0)
    k1, k2, k3, k4, k5, k6, k7, k8 = jax.random.split(key, 8)

    # Primary: NCHW-style inputs (batch=2, C=4, H=W=16).
    pred = jax.random.normal(k1, (2, 4, 16, 16), dtype=jnp.float32)
    true = jax.random.normal(k2, (2, 4, 16, 16), dtype=jnp.float32)
    loss = rmse_loss(pred, true)
    jax.block_until_ready(loss)
    ref = jnp.sqrt(jnp.mean((pred - true) ** 2) + 1e-8)
    assert jnp.allclose(loss, ref, rtol=1e-5, atol=1e-6), (loss, ref)

    # Small unaligned input: exercises the plain-JAX ragged-tail path only.
    p2 = jax.random.normal(k3, (2, 300), dtype=jnp.float32)
    t2 = jax.random.normal(k4, (2, 300), dtype=jnp.float32)
    l2 = rmse_loss(p2, t2)
    r2 = jnp.sqrt(jnp.mean((p2 - t2) ** 2) + 1e-8)
    assert jnp.allclose(l2, r2, rtol=1e-5, atol=1e-6), (l2, r2)

    # Larger unaligned input: default (full-extent) tile + JAX-side tail.
    p3 = jax.random.normal(k5, (2, 3, 211, 257), dtype=jnp.float32)
    t3 = jax.random.normal(k6, (2, 3, 211, 257), dtype=jnp.float32)
    l3 = rmse_loss(p3, t3)
    r3 = jnp.sqrt(jnp.mean((p3 - t3) ** 2) + 1e-8)
    assert jnp.allclose(l3, r3, rtol=2e-5, atol=1e-6), (l3, r3)

    # Same data with tiny forced tiles + 2-way split: exercises multi-tile
    # grid, the pl.when-gated partial-tile mask and the clamped duplicate tile.
    l3b = rmse_loss(p3, t3, target_block_bytes=512 * LANES * 4, num_core_splits=2)
    assert jnp.allclose(l3b, r3, rtol=2e-5, atol=1e-6), (l3b, r3)

    # bf16 inputs: exercises the dtype-scaled tile target and in-kernel upcast.
    p4 = jax.random.normal(k7, (4, 8, 64), dtype=jnp.bfloat16)
    t4 = jax.random.normal(k8, (4, 8, 64), dtype=jnp.bfloat16)
    l4 = rmse_loss(p4, t4)
    r4 = jnp.sqrt(jnp.mean((p4.astype(jnp.float32) - t4.astype(jnp.float32)) ** 2) + 1e-8)
    assert jnp.allclose(l4, r4, rtol=1e-4, atol=1e-5), (l4, r4)

    jax.block_until_ready((loss, l2, l3, l3b, l4))
    print("KERNEL_OK")
</pallas_src>

<mosaic_0001>
module attributes {stable_mosaic.version = 11 : i64} {
  func.func @_sq_err_partial_kernel(%arg0: i32, %arg1: i32, %arg2: memref<16x128xf32, #tpu.memory_space<vmem>>, %arg3: memref<16x128xf32, #tpu.memory_space<vmem>>, %arg4: memref<8x128xf32, #tpu.memory_space<vmem>>) attributes {dimension_semantics = [#tpu.dimension_semantics<parallel>, #tpu.dimension_semantics<arbitrary>], iteration_bounds = array<i64: 1, 1>, scalar_prefetch = 0 : i64, scratch_operands = 0 : i64, tpu.core_type = #tpu.core_type<tc>, window_params = [{transform_indices = @transform_0, window_bounds = array<i64: 16, 128>}, {transform_indices = @transform_1, window_bounds = array<i64: 16, 128>}, {transform_indices = @transform_2, window_bounds = array<i64: 8, 128>}]} {
    %c0_i32 = arith.constant 0 : i32
    %0 = arith.cmpi eq, %arg1, %c0_i32 : i32
    %1 = arith.extui %0 : i1 to i32
    %c0_i32_0 = arith.constant 0 : i32
    %2 = arith.cmpi ne, %1, %c0_i32_0 : i32
    scf.if %2 {
      %cst_8 = arith.constant 0.000000e+00 : f32
      %12 = vector.broadcast %cst_8 : f32 to vector<8x128xf32>
      %c0_9 = arith.constant 0 : index
      %c0_10 = arith.constant 0 : index
      %13 = vector.load %arg4[%c0_9, %c0_10] : memref<8x128xf32, #tpu.memory_space<vmem>>, vector<8x128xf32>
      tpu.vector_store %arg4[%c0_9, %c0_10], %12 {strides = array<i32>} : memref<8x128xf32, #tpu.memory_space<vmem>>, vector<8x128xf32>,
    } else {
    }
    %c0 = arith.constant 0 : index
    %c0_1 = arith.constant 0 : index
    %3 = vector.load %arg2[%c0, %c0_1] : memref<16x128xf32, #tpu.memory_space<vmem>>, vector<16x128xf32>
    %c0_2 = arith.constant 0 : index
    %c0_3 = arith.constant 0 : index
    %4 = vector.load %arg3[%c0_2, %c0_3] : memref<16x128xf32, #tpu.memory_space<vmem>>, vector<16x128xf32>
    %5 = arith.subf %3, %4 : vector<16x128xf32>
    %6 = arith.mulf %5, %5 : vector<16x128xf32>
    %c0_4 = arith.constant 0 : index
    %c0_5 = arith.constant 0 : index
    %7 = vector.load %arg4[%c0_4, %c0_5] : memref<8x128xf32, #tpu.memory_space<vmem>>, vector<8x128xf32>
    %8 = vector.shape_cast %6 : vector<16x128xf32> to vector<2x8x128xf32>
    %cst = arith.constant dense<0.000000e+00> : vector<8x128xf32>
    %9 = vector.multi_reduction <add>, %8, %cst [0] : vector<2x8x128xf32> to vector<8x128xf32>
    %10 = arith.addf %7, %9 : vector<8x128xf32>
    %c0_6 = arith.constant 0 : index
    %c0_7 = arith.constant 0 : index
    %11 = vector.load %arg4[%c0_6, %c0_7] : memref<8x128xf32, #tpu.memory_space<vmem>>, vector<8x128xf32>
    tpu.vector_store %arg4[%c0_6, %c0_7], %10 {strides = array<i32>} : memref<8x128xf32, #tpu.memory_space<vmem>>, vector<8x128xf32>,
    return
  }
  func.func @transform_0(%arg0: i32, %arg1: i32) -> (i32, i32) {
    %c1_i32 = arith.constant 1 : i32
    %0 = arith.muli %arg0, %c1_i32 : i32
    %1 = arith.addi %0, %arg1 : i32
    %c0_i32 = arith.constant 0 : i32
    %2 = arith.minsi %1, %c0_i32 : i32
    %c0_i32_0 = arith.constant 0 : i32
    %c0_i32_1 = arith.constant 0 : i32
    return %2, %c0_i32_0 : i32, i32
  }
  func.func @transform_1(%arg0: i32, %arg1: i32) -> (i32, i32) {
    %c1_i32 = arith.constant 1 : i32
    %0 = arith.muli %arg0, %c1_i32 : i32
    %1 = arith.addi %0, %arg1 : i32
    %c0_i32 = arith.constant 0 : i32
    %2 = arith.minsi %1, %c0_i32 : i32
    %c0_i32_0 = arith.constant 0 : i32
    %c0_i32_1 = arith.constant 0 : i32
    return %2, %c0_i32_0 : i32, i32
  }
  func.func @transform_2(%arg0: i32, %arg1: i32) -> (i32, i32) {
    %c0_i32 = arith.constant 0 : i32
    %c0_i32_0 = arith.constant 0 : i32
    return %arg0, %c0_i32 : i32, i32
  }
}

</mosaic_0001>

<bundles_post_ra>
// kernel: tpu_custom_call.1
= control target key start
LH: loop header
LB: loop body
LE: loop exit
PB: predicated region body
PF: predicated region fallthrough
CT: control target
= control target key end

     0   :  { %7 = vsyncpa [#allocation3], 0  ;;  %s198_s0 = inlined_call_operand.hbm [shape: f32[16,128], index: 0, kind: input, shape index: {}]   ;;  %s199_s1 = inlined_call_operand.hbm [shape: f32[16,128], index: 1, kind: input, shape index: {}]   ;;  %s200_s2 = inlined_call_operand.hbm [shape: f32[8,128], index: 2, kind: output, shape index: {}]  }
   0x1   :  { %8 = vsyncpa [#allocation6], 0 }
   0x2   :  { %9 = vsyncpa [#allocation4], 0  ;;  %s169_s9 = smov [#allocation2]  }
   0x3   :  { %s21_s10 = sshll.u32 %s169_s9, 4  ;;  %s22_s10 = int_to_ptr.vmem [resolvable:$true] %s21_s10 }
   0x4   :  { %s111_s11 = scalar_lea.vmem %s22_s10, 256  ;;  %p116_p1 = scmp.lt.s32.totalorder %s22_s10, %s22_s10 }
   0x5   :  { %p112_p0 = scmp.ne.s32.totalorder %s22_s10, %s111_s11  ;;  %p117_p2 = scmp.lt.s32.totalorder %s111_s11, %s111_s11 }
   0x7   :  { %p118_p3 = por %p117_p2, %p116_p1 }
   0x9   :  { %p119_p4 = pnand %p118_p3, %p112_p0 }
   0xb   :  { %122 = shalt.err (!%p119_p4)
}
   0xc   :  { %s170_s12 = smov 128   ;;  %s171_s13 = smov 8  }
   0xd   :  { %27 = dma.hbm_to_vmem [thread:$0]  %s198_s0, 256, %s22_s10, [#allocation3], %s170_s12, %s170_s12, %s171_s13  }
   0xe   :  { %s172_s16 = smov [#allocation5]  }
   0xf   :  { %s39_s17 = sshll.u32 %s172_s16, 4  ;;  %s40_s17 = int_to_ptr.vmem [resolvable:$true] %s39_s17 }
  0x10   :  { %s131_s18 = scalar_lea.vmem %s40_s17, 256  ;;  %p136_p6 = scmp.lt.s32.totalorder %s40_s17, %s40_s17 }
  0x11   :  { %p132_p5 = scmp.ne.s32.totalorder %s40_s17, %s131_s18  ;;  %p137_p7 = scmp.lt.s32.totalorder %s131_s18, %s131_s18 }
  0x13   :  { %p138_p8 = por %p137_p7, %p136_p6 }
  0x15   :  { %p139_p9 = pnand %p138_p8, %p132_p5 }
  0x17   :  { %142 = shalt.err (!%p139_p9)
}
  0x18   :  { %45 = dma.hbm_to_vmem [thread:$0]  %s199_s1, 256, %s40_s17, [#allocation6], %s170_s12, %s170_s12, %s171_s13  }
  0x19   :  { %163 = dma.done.wait [#allocation3], 256  }
  0x1a   :  { %164 = vsyncadd [#allocation3], 4294967040 }
  0x1b   :  { %165 = dma.done.wait [#allocation6], 256  }
  0x1c   :  { %166 = vsyncadd [#allocation6], 4294967040  ;;  %v65_v0 = vld [vmem:[#allocation2] sm:$0xff]  ;;  %v66_v1 = vld [vmem:[#allocation2 + $0x8] sm:$0xff]  ;;  %s173_s0 = smov [#allocation7]  }
  0x1d   :  { %v67_v2 = vld [vmem:[#allocation5] sm:$0xff]  ;;  %v68_v3 = vld [vmem:[#allocation5 + $0x8] sm:$0xff]  ;;  %s83_s21 = sshll.u32 %s173_s0, 4  ;;  %s84_s21 = int_to_ptr.vmem [resolvable:$true] %s83_s21 }
  0x1e   :  { %v69_v4 = vsub.f32 %v65_v0, %v67_v2  ;;  %v70_v5 = vsub.f32 %v66_v1, %v68_v3  ;;  %s143_s22 = scalar_lea.vmem %s84_s21, 128  ;;  %p148_p11 = scmp.lt.s32.totalorder %s84_s21, %s84_s21 }
  0x1f   :  { %p144_p10 = scmp.ne.s32.totalorder %s84_s21, %s143_s22  ;;  %p149_p12 = scmp.lt.s32.totalorder %s143_s22, %s143_s22 }
  0x20   :  { %v71_v6 = vmul.f32 %v69_v4, %v69_v4  ;;  %v72_v7 = vmul.f32 %v70_v5, %v70_v5 }
  0x21   :  { %p150_p13 = por %p149_p12, %p148_p11 }
  0x22   :  { %v74_v8 = vadd.f32 %v72_v7, %v71_v6 }
  0x23   :  { %p151_p0 = pnand %p150_p13, %p144_p10 }
  0x24   :  { %76 = vst [vmem:[#allocation7] sm:$0xff] %v74_v8 }
  0x25   :  { %154 = shalt.err (!%p151_p0)
}
  0x26   :  { %86 = dma.vmem_to_hbm [thread:$0]  %s84_s21, 128, %s200_s2, [#allocation4]  }
  0x27   :  { %167 = dma.done.wait [#allocation4], 128  }
  0x28   :  { %168 = vsyncadd [#allocation4], 4294967168 }
  0x29   :  { %90 = vsyncpa [#allocation3], 1 }
  0x2a   :  { %91 = vsyncpa [#allocation6], 1 }
  0x2b   :  { %92 = vsyncpa [#allocation4], 1 }

</bundles_post_ra>
